<compile_context>
chip_gen: v6e
topology: v6e:2x2x1
jax: 0.10.0
libtpu: 0.0.40
codegen_flags: <defaults>
</compile_context>

<pallas_src>
import functools
import math

import jax
import jax.numpy as jnp
from jax.experimental import pallas as pl
from jax.experimental.pallas import tpu as pltpu

F32 = jnp.float32
BF16 = jnp.bfloat16
BN_EPS = 1e-5


def _round_up(x, m):
    return ((x + m - 1) // m) * m


def _silu(x):
    return x * jax.nn.sigmoid(x)


def _fold_bn(bn):
    """BatchNorm (eval mode) folded to a single scale/shift FMA."""
    scale = bn["gamma"] * jax.lax.rsqrt(bn["var"] + BN_EPS)
    shift = bn["beta"] - bn["mean"] * scale
    return scale.reshape(1, -1).astype(F32), shift.reshape(1, -1).astype(F32)


def _pad_bins(centers, w):
    """Pad RBF bin count to a lane multiple with zero weight rows (exact)."""
    bins = centers.shape[0]
    bins_pad = _round_up(bins, 128)
    c = jnp.pad(centers, (0, bins_pad - bins)).reshape(1, bins_pad).astype(F32)
    w = jnp.pad(w, ((0, bins_pad - bins), (0, 0))).astype(BF16)
    return c, w


# ---------------------------------------------------------------------------
# generic Linear kernel (bf16 operands, f32 accumulation) — atom embedding
# ---------------------------------------------------------------------------
def _linear_kernel(x_ref, w_ref, b_ref, o_ref):
    o_ref[...] = (jnp.dot(x_ref[...], w_ref[...], preferred_element_type=F32)
                  + b_ref[...])


def linear(x, w, b, tile_m=256):
    m, k = x.shape
    _, n = w.shape
    k_pad = _round_up(k, 128)            # zero-pad contraction dim (exact)
    if k_pad != k:
        x = jnp.pad(x, ((0, 0), (0, k_pad - k)))
        w = jnp.pad(w, ((0, k_pad - k), (0, 0)))
    tm = _round_up(m, 8) if m <= tile_m else tile_m
    m_pad = _round_up(m, tm)
    if m_pad != m:
        x = jnp.pad(x, ((0, m_pad - m), (0, 0)))
    out = pl.pallas_call(
        _linear_kernel,
        out_shape=jax.ShapeDtypeStruct((m_pad, n), F32),
        grid=(m_pad // tm,),
        in_specs=[
            pl.BlockSpec((tm, k_pad), lambda i: (i, 0)),
            pl.BlockSpec((k_pad, n), lambda i: (0, 0)),
            pl.BlockSpec((1, n), lambda i: (0, 0)),
        ],
        out_specs=pl.BlockSpec((tm, n), lambda i: (i, 0)),
        compiler_params=pltpu.CompilerParams(dimension_semantics=("parallel",)),
    )(x.astype(BF16), w.astype(BF16), b.reshape(1, n).astype(F32))
    return out[:m]


# ---------------------------------------------------------------------------
# fused local + infinite edge embedding (single launch, bf16 output)
#   local tiles   : RBF(gaussian)(-0.75/d) -> Linear -> SiLU
#   infinite tiles: RBF(multiquadric)(feat) -> Linear -> softplus -> BN
# ---------------------------------------------------------------------------
def _edge_embed_fused_kernel(f_ref, lc_ref, lw_ref, lb_ref,
                             ic_ref, iw_ref, ib_ref, isc_ref, ish_ref,
                             o_ref, *, gamma_loc, gamma_inf, n_local_tiles):
    step = pl.program_id(0)

    @pl.when(step < n_local_tiles)
    def _():
        # NOTE: like the original module, no epsilon guard on 1/d (d > 0);
        # padded rows carry d = 1.0 and are masked out later (dst sentinel).
        d = -0.75 / f_ref[...]                                # [TE, 1]
        base = gamma_loc * (d - lc_ref[...])                  # [TE, bins]
        rbf = jnp.exp(-(base * base)).astype(BF16)
        y = jnp.dot(rbf, lw_ref[...], preferred_element_type=F32) + lb_ref[...]
        o_ref[...] = _silu(y).astype(BF16)

    @pl.when(step >= n_local_tiles)
    def _():
        base = gamma_inf * (f_ref[...] - ic_ref[...])         # [TE, bins]
        rbf = jnp.sqrt(1.0 + base * base).astype(BF16)
        y = jnp.dot(rbf, iw_ref[...], preferred_element_type=F32) + ib_ref[...]
        y = jax.nn.softplus(y)
        o_ref[...] = (y * isc_ref[...] + ish_ref[...]).astype(BF16)


def fused_edge_embedding(feat_col, n_local_tiles, p, tile_e):
    e_pad = feat_col.shape[0]
    fout = p["edge_w"].shape[1]
    lc, lw = _pad_bins(p["edge_centers"], p["edge_w"])
    ic, iw = _pad_bins(p["inf_centers"], p["inf_w"])
    isc, ish = _fold_bn(p["inf_bn"])
    full = lambda shape: pl.BlockSpec(shape, lambda i: (0, 0))
    return pl.pallas_call(
        functools.partial(_edge_embed_fused_kernel,
                          gamma_loc=p["edge_gamma"], gamma_inf=p["inf_gamma"],
                          n_local_tiles=n_local_tiles),
        out_shape=jax.ShapeDtypeStruct((e_pad, fout), BF16),
        grid=(e_pad // tile_e,),
        in_specs=[
            pl.BlockSpec((tile_e, 1), lambda i: (i, 0)),
            full((1, lc.shape[1])), full(lw.shape), full((1, fout)),
            full((1, ic.shape[1])), full(iw.shape), full((1, fout)),
            full((1, fout)), full((1, fout)),
        ],
        out_specs=pl.BlockSpec((tile_e, fout), lambda i: (i, 0)),
        compiler_params=pltpu.CompilerParams(dimension_semantics=("parallel",)),
    )(feat_col, lc, lw, p["edge_b"].reshape(1, fout).astype(F32),
      ic, iw, p["inf_b"].reshape(1, fout).astype(F32), isc, ish)


# ---------------------------------------------------------------------------
# PotNetConv layer
# ---------------------------------------------------------------------------
def _conv_kernel(x_ref, ea_ref, dstc_ref, srcc_ref,
                 w1s_ref, b1s_ref, wf2_ref, bf2_ref, w2_ref, b2_ref,
                 bisc_ref, bish_ref, bsc_ref, bsh_ref,
                 o_ref, acc_ref, xbf_ref):
    step = pl.program_id(0)
    n, f = x_ref.shape
    te = ea_ref.shape[0]

    @pl.when(step == 0)
    def _():
        acc_ref[...] = jnp.zeros_like(acc_ref)
        xbf_ref[...] = x_ref[...].astype(BF16)       # cast node features ONCE

    x_bf = xbf_ref[...]                              # [N, F] bf16

    # one-hot gather matrices from small int32 index columns.  Padded edges
    # carry dst == N (sentinel) -> all-zero rows -> exact tail masking.
    lane_nodes = jax.lax.broadcasted_iota(jnp.int32, (te, n), 1)
    dst_oh = (lane_nodes == dstc_ref[...]).astype(BF16)   # [TE, N]
    src_oh = (lane_nodes == srcc_ref[...]).astype(BF16)   # [TE, N]

    # gathers are exact in bf16 (single nonzero term per row)
    xi = jnp.dot(dst_oh, x_bf, preferred_element_type=BF16)   # x_i = x[dst]
    xj = jnp.dot(src_oh, x_bf, preferred_element_type=BF16)   # x_j = x[src]
    ea = ea_ref[...]                                          # [TE, F] bf16

    # stage 1 (gate | message hidden): three accumulating dots against static
    # slices of the stacked [3F, 2F] weight — no [TE,3F] concatenate copy.
    h = jnp.dot(xi, w1s_ref[0:f, :], preferred_element_type=F32)
    h = h + jnp.dot(xj, w1s_ref[f:2 * f, :], preferred_element_type=F32)
    h = h + jnp.dot(ea, w1s_ref[2 * f:3 * f, :], preferred_element_type=F32)
    h = _silu(h + b1s_ref[...])                               # [TE, 2F] f32
    hg = h[:, :f].astype(BF16)
    hm = h[:, f:].astype(BF16)

    # stage 2: gate / message second Linear, folded BN, sigmoid gate
    gate = jnp.dot(hg, wf2_ref[...], preferred_element_type=F32) + bf2_ref[...]
    msg_lin = jnp.dot(hm, w2_ref[...], preferred_element_type=F32) + b2_ref[...]
    score = jax.nn.sigmoid(gate * bisc_ref[...] + bish_ref[...])
    msg = (score * msg_lin).astype(BF16)                      # [TE, F]

    # scatter-add over target nodes: contract the edge axis of the dst one-hot
    acc_ref[...] += jax.lax.dot_general(
        dst_oh, msg, (((0,), (0,)), ((), ())), preferred_element_type=F32)

    @pl.when(step == pl.num_programs(0) - 1)
    def _():
        agg = acc_ref[...] * bsc_ref[...] + bsh_ref[...]      # folded BatchNorm
        o_ref[...] = jnp.maximum(x_ref[...] + agg, 0.0)       # residual + ReLU


def _conv_vmem_limit(n, f, tile_e):
    f32, b16 = 4, 2
    resident = n * f * (3 * f32 + b16)                 # x, acc, out (f32) + xbf
    weights = (3 * f) * (2 * f) * b16 + 2 * f * f * b16 + 10 * f * f32
    per_step = (tile_e * f * b16                       # edge features
                + 2 * tile_e * n * b16                 # one-hot tiles
                + tile_e * 2 * f * f32                 # h (2F wide, f32)
                + 4 * tile_e * f * f32                 # gate/msg/score temps
                + 2 * tile_e * f32)                    # index columns
    need = resident + weights + 3 * per_step           # double buffer + slack
    return int(max(need, 32 * 1024 * 1024))


def potnet_conv(x, ef, dst_col, src_col, c, tile_e):
    n, f = x.shape
    e_pad = ef.shape[0]
    assert e_pad % tile_e == 0
    full = lambda shape: pl.BlockSpec(shape, lambda i: (0, 0))

    # stacked first-stage weights: [3F, 2F] (gate | message)
    w1s = jnp.concatenate([c["wf1"], c["w1"]], axis=1).astype(BF16)
    b1s = jnp.concatenate([c["bf1"], c["b1"]], axis=0).reshape(1, 2 * f)
    bisc, bish = _fold_bn(c["bn_int"])
    bsc, bsh = _fold_bn(c["bn"])

    in_specs = [
        full((n, f)),                                   # x (f32, resident)
        pl.BlockSpec((tile_e, f), lambda i: (i, 0)),    # edge features (bf16)
        pl.BlockSpec((tile_e, 1), lambda i: (i, 0)),    # dst column
        pl.BlockSpec((tile_e, 1), lambda i: (i, 0)),    # src column
        full((3 * f, 2 * f)), full((1, 2 * f)),         # stacked stage-1
        full((f, f)), full((1, f)),                     # gate stage-2
        full((f, f)), full((1, f)),                     # msg stage-2
        full((1, f)), full((1, f)),                     # folded bn_interaction
        full((1, f)), full((1, f)),                     # folded bn
    ]
    # TODO(synk): on v6e/v7x a block-diagonal [2F,2F] stage-2 stack and a
    # two-TensorCore split of the edge reduction would further help; kept
    # generation-neutral here.
    return pl.pallas_call(
        _conv_kernel,
        out_shape=jax.ShapeDtypeStruct((n, f), F32),
        grid=(e_pad // tile_e,),
        in_specs=in_specs,
        out_specs=pl.BlockSpec((n, f), lambda i: (0, 0)),
        scratch_shapes=[pltpu.VMEM((n, f), F32), pltpu.VMEM((n, f), BF16)],
        input_output_aliases={0: 0},
        compiler_params=pltpu.CompilerParams(
            dimension_semantics=("arbitrary",),
            vmem_limit_bytes=_conv_vmem_limit(n, f, tile_e)),
    )(x, ef, dst_col, src_col, w1s, b1s,
      c["wf2"].astype(BF16), c["bf2"].reshape(1, f).astype(F32),
      c["w2"].astype(BF16), c["b2"].reshape(1, f).astype(F32),
      bisc, bish, bsc, bsh)


# ---------------------------------------------------------------------------
# readout: global_mean_pool + fc (ShiftedSoftplus) + fc_out
# ---------------------------------------------------------------------------
def _readout_kernel(pool_ref, x_ref, w1_ref, b1_ref, w2t_ref, b2_ref, o_ref):
    feats = jnp.dot(pool_ref[...], x_ref[...], preferred_element_type=F32)
    h = jnp.dot(feats, w1_ref[...], preferred_element_type=F32) + b1_ref[...]
    h = jax.nn.softplus(h) - math.log(2.0)
    o_ref[...] = jnp.sum(h * w2t_ref[...], axis=1, keepdims=True) + b2_ref[...]


def readout(pool, x, fc_w, fc_b, out_w, out_b):
    g = pool.shape[0]
    fdim = x.shape[1]
    vmem = pl.BlockSpec(memory_space=pltpu.MemorySpace.VMEM)
    return pl.pallas_call(
        _readout_kernel,
        out_shape=jax.ShapeDtypeStruct((g, 1), F32),
        in_specs=[vmem] * 6,
        out_specs=vmem,
    )(pool, x, fc_w, fc_b.reshape(1, fdim),
      out_w.reshape(1, fdim), out_b.reshape(1, 1))


# ---------------------------------------------------------------------------
# parameter init (deterministic, PyTorch-Linear-style uniform)
# ---------------------------------------------------------------------------
def _linear_init(key, fan_in, fan_out):
    kw, kb = jax.random.split(key)
    bound = 1.0 / math.sqrt(fan_in)
    w = jax.random.uniform(kw, (fan_in, fan_out), F32, -bound, bound)
    b = jax.random.uniform(kb, (fan_out,), F32, -bound, bound)
    return w, b


def _bn_init(n):
    return dict(gamma=jnp.ones((n,), F32), beta=jnp.zeros((n,), F32),
                mean=jnp.zeros((n,), F32), var=jnp.ones((n,), F32))


def init_params(key, atom_in, fc, inf_bins, n_layers):
    ks = iter(jax.random.split(key, 8 + 4 * n_layers))
    p = {}
    p["atom_w"], p["atom_b"] = _linear_init(next(ks), atom_in, fc)
    # RBFExpansion: centers = linspace(vmin, vmax, bins); gamma = 1/mean(diff)
    p["edge_centers"] = jnp.linspace(-4.0, 4.0, fc).astype(F32)
    p["edge_gamma"] = float((fc - 1) / 8.0)
    p["edge_w"], p["edge_b"] = _linear_init(next(ks), fc, fc)
    p["inf_centers"] = jnp.linspace(-4.0, 4.0, inf_bins).astype(F32)
    p["inf_gamma"] = float((inf_bins - 1) / 8.0)
    p["inf_w"], p["inf_b"] = _linear_init(next(ks), inf_bins, fc)
    p["inf_bn"] = _bn_init(fc)
    convs = []
    for _ in range(n_layers):
        c = {}
        c["wf1"], c["bf1"] = _linear_init(next(ks), 3 * fc, fc)
        c["wf2"], c["bf2"] = _linear_init(next(ks), fc, fc)
        c["w1"], c["b1"] = _linear_init(next(ks), 3 * fc, fc)
        c["w2"], c["b2"] = _linear_init(next(ks), fc, fc)
        c["bn_int"] = _bn_init(fc)
        c["bn"] = _bn_init(fc)
        convs.append(c)
    p["convs"] = convs
    p["fc_w"], p["fc_b"] = _linear_init(next(ks), fc, fc)
    p["out_w"], p["out_b"] = _linear_init(next(ks), fc, 1)
    return p


# ---------------------------------------------------------------------------
# full PotNet forward
# ---------------------------------------------------------------------------
def potnet_forward(params, x, edge_index, edge_attr,
                   inf_edge_index, inf_edge_attr, batch, num_graphs,
                   potentials, tile_e=256):
    n = x.shape[0]

    # node_features = atom_embedding(x)   (K padded 92 -> 128 inside linear())
    node_feat = linear(x, params["atom_w"], params["atom_b"])

    # per-segment padding so every edge tile is purely local or purely infinite
    e_loc, e_inf = edge_attr.shape[0], inf_edge_attr.shape[0]
    e_loc_pad = _round_up(e_loc, tile_e)
    e_inf_pad = _round_up(e_inf, tile_e)
    n_local_tiles = e_loc_pad // tile_e

    # scalar per edge: local = raw distance d (kernel applies -0.75/d),
    # infinite = sum_i a_i * pot_i (tiny contraction done wrapper-side)
    d_loc = jnp.pad(edge_attr.reshape(e_loc, 1),
                    ((0, e_loc_pad - e_loc), (0, 0)), constant_values=1.0)
    s_inf = jnp.pad((inf_edge_attr @ potentials).reshape(e_inf, 1),
                    ((0, e_inf_pad - e_inf), (0, 0)))
    feat_col = jnp.concatenate([d_loc, s_inf], axis=0)

    # fused local+infinite edge embedding -> bf16 [E_pad, F] (single launch)
    ef = fused_edge_embedding(feat_col, n_local_tiles, params, tile_e)

    # index columns; padded edges get dst = N (sentinel -> zero contribution)
    def pad_idx(idx, tgt, val):
        return jnp.pad(idx.astype(jnp.int32), (0, tgt - idx.shape[0]),
                       constant_values=val)

    src = jnp.concatenate([pad_idx(edge_index[0], e_loc_pad, 0),
                           pad_idx(inf_edge_index[0], e_inf_pad, 0)])
    dst = jnp.concatenate([pad_idx(edge_index[1], e_loc_pad, n),
                           pad_idx(inf_edge_index[1], e_inf_pad, n)])
    e_pad = e_loc_pad + e_inf_pad
    dst_col = dst.reshape(e_pad, 1)
    src_col = src.reshape(e_pad, 1)

    for c in params["convs"]:
        node_feat = potnet_conv(node_feat, ef, dst_col, src_col, c, tile_e)

    # global_mean_pool as a matmul with a normalized pooling matrix
    pool = jax.nn.one_hot(batch, num_graphs, dtype=F32).T   # [G, N]
    pool = pool / jnp.maximum(jnp.sum(pool, axis=1, keepdims=True), 1.0)

    out = readout(pool, node_feat, params["fc_w"], params["fc_b"],
                  params["out_w"], params["out_b"])          # [G, 1]
    return jnp.squeeze(out)


# ---------------------------------------------------------------------------
if __name__ == "__main__":
    key = jax.random.PRNGKey(0)

    N_NODES, N_GRAPHS = 16, 2
    ATOM_IN, FC, INF_BINS = 92, 128, 64
    E_LOC, E_INF = 128, 128
    CONV_LAYERS = 3
    POTENTIALS = jnp.array([1.0, 0.5, 0.1], dtype=F32)   # config.potentials

    ks = jax.random.split(key, 8)
    x = jax.random.normal(ks[0], (N_NODES, ATOM_IN), F32)
    edge_index = jax.random.randint(ks[1], (2, E_LOC), 0, N_NODES,
                                    dtype=jnp.int32)
    edge_attr = jax.random.uniform(ks[2], (E_LOC,), F32, 1.0, 5.0)
    inf_edge_index = jax.random.randint(ks[3], (2, E_INF), 0, N_NODES,
                                        dtype=jnp.int32)
    inf_edge_attr = jax.random.uniform(ks[4], (E_INF, POTENTIALS.shape[0]),
                                       F32, 0.1, 1.0)
    batch = jnp.repeat(jnp.arange(N_GRAPHS, dtype=jnp.int32),
                       N_NODES // N_GRAPHS)

    params = init_params(ks[5], ATOM_IN, FC, INF_BINS, CONV_LAYERS)

    out = potnet_forward(params, x, edge_index, edge_attr,
                         inf_edge_index, inf_edge_attr, batch, N_GRAPHS,
                         POTENTIALS)
    out = jax.block_until_ready(out)
    assert out.shape == (N_GRAPHS,), out.shape
    assert bool(jnp.all(jnp.isfinite(out)))
    print("KERNEL_OK")
</pallas_src>

<mosaic_0001>
module attributes {stable_mosaic.version = 11 : i64} {
  func.func @_linear_kernel(%arg0: i32, %arg1: memref<16x128xbf16, #tpu.memory_space<vmem>>, %arg2: memref<128x128xbf16, #tpu.memory_space<vmem>>, %arg3: memref<1x128xf32, #tpu.memory_space<vmem>>, %arg4: memref<16x128xf32, #tpu.memory_space<vmem>>) attributes {dimension_semantics = [#tpu.dimension_semantics<parallel>], iteration_bounds = array<i64: 1>, scalar_prefetch = 0 : i64, scratch_operands = 0 : i64, tpu.core_type = #tpu.core_type<tc>, window_params = [{transform_indices = @transform_0, window_bounds = array<i64: 16, 128>}, {pipeline_mode = #tpu.pipeline_mode<synchronous>, transform_indices = @transform_1, window_bounds = array<i64: 128, 128>}, {pipeline_mode = #tpu.pipeline_mode<synchronous>, transform_indices = @transform_2, window_bounds = array<i64: 1, 128>}, {transform_indices = @transform_3, window_bounds = array<i64: 16, 128>}]} {
    %c0 = arith.constant 0 : index
    %c0_0 = arith.constant 0 : index
    %0 = vector.load %arg1[%c0, %c0_0] : memref<16x128xbf16, #tpu.memory_space<vmem>>, vector<16x128xbf16>
    %c0_1 = arith.constant 0 : index
    %c0_2 = arith.constant 0 : index
    %1 = vector.load %arg2[%c0_1, %c0_2] : memref<128x128xbf16, #tpu.memory_space<vmem>>, vector<128x128xbf16>
    %cst = arith.constant dense<0.000000e+00> : vector<16x128xf32>
    %2 = tpu.matmul %0, %1, %cst {dimension_numbers = #tpu.dot_dimension_numbers<[1], [0], [0], [1], [0, 0, 1, 1], [], []>} : vector<16x128xbf16>, vector<128x128xbf16>, vector<16x128xf32> -> vector<16x128xf32>
    %c0_3 = arith.constant 0 : index
    %c0_4 = arith.constant 0 : index
    %3 = vector.load %arg3[%c0_3, %c0_4] : memref<1x128xf32, #tpu.memory_space<vmem>>, vector<1x128xf32>
    %4 = vector.broadcast %3 : vector<1x128xf32> to vector<16x128xf32>
    %5 = arith.addf %2, %4 : vector<16x128xf32>
    %c0_5 = arith.constant 0 : index
    %c0_6 = arith.constant 0 : index
    %6 = vector.load %arg4[%c0_5, %c0_6] : memref<16x128xf32, #tpu.memory_space<vmem>>, vector<16x128xf32>
    tpu.vector_store %arg4[%c0_5, %c0_6], %5 {strides = array<i32>} : memref<16x128xf32, #tpu.memory_space<vmem>>, vector<16x128xf32>,
    return
  }
  func.func @transform_0(%arg0: i32) -> (i32, i32) {
    %c0_i32 = arith.constant 0 : i32
    %c0_i32_0 = arith.constant 0 : i32
    return %arg0, %c0_i32 : i32, i32
  }
  func.func @transform_1(%arg0: i32) -> (i32, i32) {
    %c0_i32 = arith.constant 0 : i32
    %c0_i32_0 = arith.constant 0 : i32
    %c0_i32_1 = arith.constant 0 : i32
    return %c0_i32, %c0_i32_0 : i32, i32
  }
  func.func @transform_2(%arg0: i32) -> (i32, i32) {
    %c0_i32 = arith.constant 0 : i32
    %c0_i32_0 = arith.constant 0 : i32
    %c0_i32_1 = arith.constant 0 : i32
    return %c0_i32, %c0_i32_0 : i32, i32
  }
  func.func @transform_3(%arg0: i32) -> (i32, i32) {
    %c0_i32 = arith.constant 0 : i32
    %c0_i32_0 = arith.constant 0 : i32
    return %arg0, %c0_i32 : i32, i32
  }
}

</mosaic_0001>

<bundles_post_ra>
// kernel: tpu_custom_call.1
= control target key start
LH: loop header
LB: loop body
LE: loop exit
PB: predicated region body
PF: predicated region fallthrough
CT: control target
= control target key end

     0   :  { %8 = vsyncpa [#allocation3], 0  ;;  %s348_s0 = inlined_call_operand.hbm [shape: bf16[16,128], index: 0, kind: input, shape index: {}]   ;;  %s349_s1 = inlined_call_operand.hbm [shape: bf16[128,128], index: 1, kind: input, shape index: {}]   ;;  %s350_s2 = inlined_call_operand.vmem [shape: f32[1,128], index: 2, kind: input, shape index: {}]   ;;  %s351_s3 = inlined_call_operand.hbm [shape: f32[16,128], index: 3, kind: output, shape index: {}]  }
   0x1   :  { %9 = vsyncpa [#allocation6], 0 }
   0x2   :  { %10 = vsyncpa [#allocation4], 0  ;;  %s307_s12 = smov [#allocation2]  }
   0x3   :  { %s16_s13 = sshll.u32 %s307_s12, 4  ;;  %s17_s13 = int_to_ptr.vmem [resolvable:$true] %s16_s13 }
   0x4   :  { %s249_s14 = scalar_lea.vmem %s17_s13, 128  ;;  %p254_p1 = scmp.lt.s32.totalorder %s17_s13, %s17_s13 }
   0x5   :  { %p250_p0 = scmp.ne.s32.totalorder %s17_s13, %s249_s14  ;;  %p255_p2 = scmp.lt.s32.totalorder %s249_s14, %s249_s14 }
   0x7   :  { %p256_p3 = por %p255_p2, %p254_p1 }
   0x9   :  { %p257_p4 = pnand %p256_p3, %p250_p0 }
   0xb   :  { %260 = shalt.err (!%p257_p4)
}
   0xc   :  { %s308_s15 = smov 64   ;;  %s309_s16 = smov 4  }
   0xd   :  { %22 = dma.hbm_to_vmem [thread:$0]  %s348_s0, 128, %s17_s13, [#allocation3], %s308_s15, %s308_s15, %s309_s16  }
   0xe   :  { %s310_s19 = smov [#allocation5]  }
   0xf   :  { %s28_s20 = sshll.u32 %s310_s19, 4  ;;  %s29_s20 = int_to_ptr.vmem [resolvable:$true] %s28_s20 }
  0x10   :  { %s269_s21 = scalar_lea.vmem %s29_s20, 1024  ;;  %p274_p6 = scmp.lt.s32.totalorder %s29_s20, %s29_s20 }
  0x11   :  { %p270_p5 = scmp.ne.s32.totalorder %s29_s20, %s269_s21  ;;  %p275_p7 = scmp.lt.s32.totalorder %s269_s21, %s269_s21 }
  0x13   :  { %p276_p8 = por %p275_p7, %p274_p6 }
  0x15   :  { %p277_p9 = pnand %p276_p8, %p270_p5 }
  0x17   :  { %280 = shalt.err (!%p277_p9)
}
  0x18   :  { %34 = dma.hbm_to_vmem [thread:$0]  %s349_s1, 1024, %s29_s20, [#allocation6], %s308_s15, %s308_s15, %s309_s16  }
  0x19   :  { %301 = dma.done.wait [#allocation3], 128  }
  0x1a   :  { %302 = vsyncadd [#allocation3], 4294967168 }
  0x1b   :  { %303 = dma.done.wait [#allocation6], 1024  }
  0x1c   :  { %304 = vsyncadd [#allocation6], 4294966272  ;;  %v311_v0 = vmov 0.0   ;;  %vm312_vm0 = vmmov 0   ;;  %v232_v1 = vld [vmem:[#allocation5 + $0x38] sm:$0xff]   ;;  %v233_v2 = vld [vmem:[#allocation5 + $0x30] sm:$0xff]  }
  0x1d   :  { %203 = vmatprep.subr.bf16.mxu0 %v311_v0  ;;  %219 = vmatprep.mubr.msk.bf16.mxu0 %vm312_vm0, %v311_v0  ;;  %v234_v3 = vld [vmem:[#allocation5 + $0x28] sm:$0xff]   ;;  %v235_v4 = vld [vmem:[#allocation5 + $0x20] sm:$0xff]   ;;  %v236_v5 = vld [vmem:[#allocation5 + $0x18] sm:$0xff]   ;;  %s313_s24 = smov [#allocation7]  }
  0x1e   :  { %204 = vmatpush3.bf16.msra.mxu0 %v232_v1  ;;  %v237_v6 = vld [vmem:[#allocation5 + $0x10] sm:$0xff]   ;;  %v238_v7 = vld [vmem:[#allocation5 + $0x8] sm:$0xff]   ;;  %v239_v8 = vld [vmem:[#allocation5] sm:$0xff]   ;;  %s171_s25 = sshll.u32 %s313_s24, 4  ;;  %s172_s25 = int_to_ptr.vmem [resolvable:$true] %s171_s25 }
  0x1f   :  { %205 = vmatprep.subr.bf16.mxu0 %v311_v0  ;;  %v240_v9 = vld [vmem:[#allocation2] sm:$0xff]   ;;  %s281_s26 = scalar_lea.vmem %s172_s25, 256  ;;  %p286_p11 = scmp.lt.s32.totalorder %s172_s25, %s172_s25 }
  0x20   :  { %v184_v10 = vld [vmem:[%s350_s2] ss:$0 sm:$0xff]  ;;  %p282_p10 = scmp.ne.s32.totalorder %s172_s25, %s281_s26  ;;  %p287_p12 = scmp.lt.s32.totalorder %s281_s26, %s281_s26 }
  0x22   :  { %206 = vmatpush3.bf16.msra.mxu0 %v233_v2  ;;  %p288_p13 = por %p287_p12, %p286_p11 }
  0x23   :  { %207 = vmatprep.subr.bf16.mxu0 %v311_v0 }
  0x24   :  { %p289_p0 = pnand %p288_p13, %p282_p10 }
  0x26   :  { %208 = vmatpush3.bf16.msra.mxu0 %v234_v3 }
  0x27   :  { %209 = vmatprep.subr.bf16.mxu0 %v311_v0 }
  0x2a   :  { %210 = vmatpush3.bf16.msra.mxu0 %v235_v4 }
  0x2b   :  { %211 = vmatprep.subr.bf16.mxu0 %v311_v0 }
  0x2e   :  { %212 = vmatpush3.bf16.msra.mxu0 %v236_v5 }
  0x2f   :  { %213 = vmatprep.subr.bf16.mxu0 %v311_v0 }
  0x32   :  { %214 = vmatpush3.bf16.msra.mxu0 %v237_v6 }
  0x33   :  { %215 = vmatprep.subr.bf16.mxu0 %v311_v0 }
  0x36   :  { %216 = vmatpush3.bf16.msra.mxu0 %v238_v7 }
  0x37   :  { %217 = vmatprep.subr.bf16.mxu0 %v311_v0 }
  0x3a   :  { %218 = vmatpush3.bf16.msra.mxu0 %v239_v8 }
  0x3d   :  { %220 = vmatmul.mubr.bf16.vlgmr.msra.gmra.mxu0 %v240_v9 }
  0xfd   :  { %v157_v11 = vpop.f32.mrf.mxu0 }
  0xfe   :  { %v158_v12 = vadd.f32 %v184_v10, %v157_v11 }
  0xff   :  { %v221_v13 = vpop.f32.mrf.mxu0 }
 0x100   :  { %164 = vst [vmem:[#allocation7] sm:$0xff] %v158_v12 }
 0x101   :  { %v160_v14 = vpop.f32.mrf.mxu0 }
 0x102   :  { %v161_v15 = vadd.f32 %v184_v10, %v160_v14 }
 0x103   :  { %v222_v16 = vpop.f32.mrf.mxu0 }
 0x104   :  { %165 = vst [vmem:[#allocation7 + $0x8] sm:$0xff] %v161_v15 }
 0x105   :  { %292 = shalt.err (!%p289_p0)
}
 0x106   :  { %s314_s27 = smov 128   ;;  %s315_s2 = smov 8  }
 0x107   :  { %177 = dma.vmem_to_hbm [thread:$0]  %s172_s25, 256, %s351_s3, [#allocation4], %s314_s27, %s314_s27, %s315_s2  }
 0x108   :  { %305 = dma.done.wait [#allocation4], 256  }
 0x109   :  { %306 = vsyncadd [#allocation4], 4294967040 }
 0x10a   :  { %181 = vsyncpa [#allocation3], 1 }
 0x10b   :  { %182 = vsyncpa [#allocation6], 1 }
 0x10c   :  { %183 = vsyncpa [#allocation4], 1 }

</bundles_post_ra>
